<compile_context>
chip_gen: v5e
topology: v5e:2x2
jax: 0.10.0
libtpu: 0.0.40
codegen_flags: <defaults>
</compile_context>

<pallas_src>
import jax
import jax.numpy as jnp
from jax.experimental import pallas as pl
from jax.experimental.pallas import tpu as pltpu

LN_EPS = 1e-5  # PyTorch nn.LayerNorm default


def _round_up(x: int, m: int) -> int:
    return ((x + m - 1) // m) * m


def prenorm_linear_kernel(x_ref, g_ref, b_ref, w_ref, bias_ref, o_ref, y_scratch):
    """Grid = (row_tiles, h_tiles); H axis is innermost ("arbitrary").

    x_ref    : (tile_rows, D)   row tile (constant across the H axis -> no re-DMA)
    g_ref    : (1, D)           LayerNorm gamma
    b_ref    : (1, D)           LayerNorm beta
    w_ref    : (D, tile_h)      weight tile (mxu dtype)
    bias_ref : (1, tile_h)      linear bias tile
    o_ref    : (tile_rows, tile_h)
    y_scratch: (tile_rows, D)   normalized rows, cached across H tiles
    """
    j = pl.program_id(1)

    # LayerNorm only once per row tile (first H tile); reuse for j > 0.
    @pl.when(j == 0)
    def _():
        x = x_ref[...].astype(jnp.float32)
        mean = jnp.mean(x, axis=-1, keepdims=True)
        centered = x - mean
        var = jnp.mean(centered * centered, axis=-1, keepdims=True)
        inv = jax.lax.rsqrt(var + LN_EPS)
        gamma = g_ref[...].astype(jnp.float32)
        beta = b_ref[...].astype(jnp.float32)
        y = centered * inv * gamma + beta
        y_scratch[...] = y.astype(y_scratch.dtype)

    # fn: Linear(dim -> hidden) on the MXU, f32 accumulation.
    out = jnp.dot(y_scratch[...], w_ref[...], preferred_element_type=jnp.float32)
    out = out + bias_ref[...].astype(jnp.float32)
    o_ref[...] = out.astype(o_ref.dtype)


def prenorm_linear(x, gamma, beta, w, bias, *, tile_rows=256, tile_h=512,
                   mxu_dtype=None, out_dtype=None, max_resident_w_bytes=None,
                   w_buffers=2, vmem_limit_bytes=None):
    """x: (B, S, D); gamma/beta: (D,); w: (D, H); bias: (H,) -> (B, S, H)."""
    B, S, D = x.shape
    H = w.shape[1]
    rows = B * S

    if mxu_dtype is None:
        mxu_dtype = w.dtype          # bf16 weights -> bf16 MXU inputs
    if out_dtype is None:
        out_dtype = x.dtype          # pass jnp.bfloat16 to halve writeback
    isz = lambda dt: jnp.dtype(dt).itemsize

    # ---- Generation-aware VMEM budget (v7x has only 64 MiB physical). ----
    try:
        vmem_cap = int(pltpu.get_tpu_info().vmem_capacity_bytes)
    except Exception:
        vmem_cap = 128 << 20
    vmem_budget = max(min(vmem_cap - (16 << 20), 100 << 20), 24 << 20)
    if max_resident_w_bytes is None:
        max_resident_w_bytes = vmem_cap // 4   # ~16 MiB v7x, ~32 MiB v5e/v6e

    # ---- H (lane) tiling: ALWAYS lane-dense (multiple of 128). ----
    padded_h = _round_up(H, 128)
    w_resident = D * padded_h * isz(mxu_dtype) <= max_resident_w_bytes
    if w_resident:
        tile_h = padded_h            # grid[1] == 1 -> W DMA'd once, stays in VMEM
    else:
        tile_h = max(128, (min(tile_h, padded_h) // 128) * 128)
        padded_h = _round_up(padded_h, tile_h)

    # ---- Row (sublane) tiling: aligned to 8, bounded padding waste. ----
    row8 = _round_up(rows, 8)
    tile_rows = _round_up(max(8, min(tile_rows, row8)), 8)
    # Shrink when dead-row fraction would exceed ~25% of real rows.
    while tile_rows > 8 and (_round_up(row8, tile_rows) - rows) * 4 > rows:
        tile_rows = _round_up(max(8, tile_rows // 2), 8)
    # Guarantee >= 2 row tiles so both v7x TensorCores get work (row axis is
    # the only "parallel" axis). Costs one extra ~0.35us grid step elsewhere.
    if row8 >= 16 and row8 // tile_rows < 2:
        tile_rows = _round_up(max(8, tile_rows // 2), 8)

    # ---- Fit the double-buffered footprint into the VMEM budget. ----
    def footprint(tr, th):
        return (2 * tr * D * isz(x.dtype)              # x tiles (double-buffered)
                + 2 * D * th * isz(mxu_dtype)          # W tile(s)
                + 2 * tr * th * isz(out_dtype)         # out tiles
                + tr * D * isz(mxu_dtype)              # y_scratch
                + 2 * (2 * D * isz(gamma.dtype) + th * isz(bias.dtype)))

    while footprint(tile_rows, tile_h) > vmem_budget:
        if tile_rows > 64:
            tile_rows = _round_up(max(8, tile_rows // 2), 8)
        elif tile_h > 128:
            tile_h = max(128, (tile_h // 2 // 128) * 128)
            w_resident = False       # residency no longer holds; stream W tiles
        else:
            break
    padded_h = _round_up(padded_h, tile_h)
    padded_rows = _round_up(row8, tile_rows)
    grid = (padded_rows // tile_rows, padded_h // tile_h)

    # ---- Pad / reshape inputs for the kernel layout. ----
    x2 = x.reshape(rows, D)
    if padded_rows != rows:
        x2 = jnp.pad(x2, ((0, padded_rows - rows), (0, 0)))
    g2 = gamma.reshape(1, D)
    b2 = beta.reshape(1, D)
    w2 = w.astype(mxu_dtype)
    bias2 = bias.reshape(1, H)
    if padded_h != H:
        w2 = jnp.pad(w2, ((0, 0), (0, padded_h - H)))
        bias2 = jnp.pad(bias2, ((0, 0), (0, padded_h - H)))

    # W spec: constant block index when resident (one DMA total); optionally a
    # deeper pipeline when streamed and VMEM headroom allows.
    w_spec = pl.BlockSpec((D, tile_h), lambda i, j: (0, j))
    if (not w_resident and grid[1] > 1 and w_buffers > 2 and
            footprint(tile_rows, tile_h)
            + (w_buffers - 2) * D * tile_h * isz(mxu_dtype) <= vmem_budget):
        w_spec = pl.BlockSpec((D, tile_h), lambda i, j: (0, j),
                              pipeline_mode=pl.Buffered(w_buffers))

    if vmem_limit_bytes is None:
        est = footprint(tile_rows, tile_h)
        vmem_limit_bytes = int(min(max(est + est // 4 + (2 << 20), 32 << 20),
                                   vmem_budget))

    # Tight bytes_accessed: W counted once when resident, grid[0] times when
    # streamed; x and out counted once (x block index constant across H axis).
    w_reads = 1 if grid[1] == 1 or w_resident else grid[0]
    cost = pl.CostEstimate(
        flops=2 * padded_rows * D * padded_h + 8 * padded_rows * D,
        transcendentals=padded_rows,  # one rsqrt per row
        bytes_accessed=(padded_rows * D * isz(x.dtype)
                        + w_reads * D * padded_h * isz(mxu_dtype)
                        + padded_rows * padded_h * isz(out_dtype)),
    )

    out2 = pl.pallas_call(
        prenorm_linear_kernel,
        out_shape=jax.ShapeDtypeStruct((padded_rows, padded_h), out_dtype),
        grid_spec=pltpu.PrefetchScalarGridSpec(
            num_scalar_prefetch=0,
            grid=grid,
            in_specs=[
                pl.BlockSpec((tile_rows, D), lambda i, j: (i, 0)),   # x rows
                pl.BlockSpec((1, D), lambda i, j: (0, 0)),           # gamma
                pl.BlockSpec((1, D), lambda i, j: (0, 0)),           # beta
                w_spec,                                              # W tile
                pl.BlockSpec((1, tile_h), lambda i, j: (0, j)),      # bias tile
            ],
            out_specs=pl.BlockSpec((tile_rows, tile_h), lambda i, j: (i, j)),
            scratch_shapes=[pltpu.VMEM((tile_rows, D), mxu_dtype)],
        ),
        compiler_params=pltpu.CompilerParams(
            # Row axis parallel (megacore); H axis arbitrary because the
            # LayerNorm scratch is written at j==0 and reused for j>0.
            dimension_semantics=("parallel", "arbitrary"),
            vmem_limit_bytes=int(vmem_limit_bytes),
        ),
        cost_estimate=cost,
    )(x2, g2, b2, w2, bias2)

    return out2[:rows, :H].reshape(B, S, H)


def prenorm_linear_ref(x, gamma, beta, w, bias):
    xf = x.astype(jnp.float32)
    mean = jnp.mean(xf, axis=-1, keepdims=True)
    var = jnp.mean((xf - mean) ** 2, axis=-1, keepdims=True)
    y = (xf - mean) * jax.lax.rsqrt(var + LN_EPS) * gamma.astype(jnp.float32) \
        + beta.astype(jnp.float32)
    return (y @ w.astype(jnp.float32) + bias.astype(jnp.float32)).astype(x.dtype)


# TODO(synk): PreNorm wraps an arbitrary `fn`; only the Linear(dim->hidden)
# instantiation is fused here. Other `fn`s would need their own kernels.


if __name__ == "__main__":
    key = jax.random.PRNGKey(0)
    kx1, kx2, kx3, kw1, kb1, kw3, kb3 = jax.random.split(key, 7)

    # ---- Test 1: small f32 case, H < 128 (lane-padding path), resident W. ----
    B, S, D, Hdim = 2, 8, 32, 32
    x = jax.random.normal(kx1, (B, S, D), dtype=jnp.float32)
    gamma = jnp.ones((D,), dtype=jnp.float32)
    beta = jnp.zeros((D,), dtype=jnp.float32)
    w = jax.random.normal(kw1, (D, Hdim), dtype=jnp.float32) * 0.02
    bias = jax.random.normal(kb1, (Hdim,), dtype=jnp.float32) * 0.01

    out = jax.block_until_ready(prenorm_linear(x, gamma, beta, w, bias))
    ref = prenorm_linear_ref(x, gamma, beta, w, bias)
    assert out.shape == (B, S, Hdim)
    assert jnp.allclose(out, ref, atol=1e-5, rtol=1e-5)

    # ---- Test 2: ragged rows (B*S not a multiple of 8/tile) -> padding path. ----
    B2, S2 = 2, 7
    x2 = jax.random.normal(kx2, (B2, S2, D), dtype=jnp.float32)
    out2 = jax.block_until_ready(prenorm_linear(x2, gamma, beta, w, bias))
    ref2 = prenorm_linear_ref(x2, gamma, beta, w, bias)
    assert out2.shape == (B2, S2, Hdim)
    assert jnp.allclose(out2, ref2, atol=1e-5, rtol=1e-5)

    # ---- Test 3: bf16 weights, resident W (grid_h == 1), megacore row split. ----
    B3, S3, D3, H3 = 2, 64, 128, 256
    x3 = jax.random.normal(kx3, (B3, S3, D3), dtype=jnp.float32)
    gamma3 = jnp.ones((D3,), dtype=jnp.float32)
    beta3 = jnp.zeros((D3,), dtype=jnp.float32)
    w3 = (jax.random.normal(kw3, (D3, H3), dtype=jnp.float32) * 0.02).astype(jnp.bfloat16)
    bias3 = jax.random.normal(kb3, (H3,), dtype=jnp.float32) * 0.01

    out3 = jax.block_until_ready(prenorm_linear(x3, gamma3, beta3, w3, bias3))
    ref3 = prenorm_linear_ref(x3, gamma3, beta3, w3, bias3)
    assert out3.shape == (B3, S3, H3)
    # bf16 MXU inputs with f32 accumulation: looser tolerance vs f32 reference.
    assert jnp.allclose(out3, ref3, atol=5e-2, rtol=5e-2)

    # ---- Test 4: force streamed W (grid_h > 1) -> LN-scratch reuse across H tiles. ----
    out4 = jax.block_until_ready(
        prenorm_linear(x3, gamma3, beta3, w3, bias3,
                       tile_h=128, max_resident_w_bytes=0))
    assert out4.shape == (B3, S3, H3)
    assert jnp.allclose(out4, ref3, atol=5e-2, rtol=5e-2)

    print("KERNEL_OK")
</pallas_src>

<mosaic_0001>
module attributes {stable_mosaic.version = 11 : i64} {
  func.func @prenorm_linear_kernel(%arg0: i32, %arg1: i32, %arg2: memref<8x32xf32, #tpu.memory_space<vmem>>, %arg3: memref<1x32xf32, #tpu.memory_space<vmem>>, %arg4: memref<1x32xf32, #tpu.memory_space<vmem>>, %arg5: memref<32x128xf32, #tpu.memory_space<vmem>>, %arg6: memref<1x128xf32, #tpu.memory_space<vmem>>, %arg7: memref<8x128xf32, #tpu.memory_space<vmem>>, %arg8: memref<8x32xf32, #tpu.memory_space<vmem>>) attributes {dimension_semantics = [#tpu.dimension_semantics<parallel>, #tpu.dimension_semantics<arbitrary>], iteration_bounds = array<i64: 2, 1>, scalar_prefetch = 0 : i64, scratch_operands = 1 : i64, tpu.core_type = #tpu.core_type<tc>, window_params = [{transform_indices = @transform_0, window_bounds = array<i64: 8, 32>}, {pipeline_mode = #tpu.pipeline_mode<synchronous>, transform_indices = @transform_1, window_bounds = array<i64: 1, 32>}, {pipeline_mode = #tpu.pipeline_mode<synchronous>, transform_indices = @transform_2, window_bounds = array<i64: 1, 32>}, {transform_indices = @transform_3, window_bounds = array<i64: 32, 128>}, {transform_indices = @transform_4, window_bounds = array<i64: 1, 128>}, {transform_indices = @transform_5, window_bounds = array<i64: 8, 128>}]} {
    %c0_i32 = arith.constant 0 : i32
    %0 = arith.cmpi eq, %arg1, %c0_i32 : i32
    %1 = arith.extui %0 : i1 to i32
    %c0_i32_0 = arith.constant 0 : i32
    %2 = arith.cmpi ne, %1, %c0_i32_0 : i32
    scf.if %2 {
      %c0_8 = arith.constant 0 : index
      %c0_9 = arith.constant 0 : index
      %10 = vector.load %arg2[%c0_8, %c0_9] : memref<8x32xf32, #tpu.memory_space<vmem>>, vector<8x32xf32>
      %cst_10 = arith.constant dense<0.000000e+00> : vector<8xf32>
      %11 = vector.multi_reduction <add>, %10, %cst_10 [1] : vector<8x32xf32> to vector<8xf32>
      %12 = vector.shape_cast %11 : vector<8xf32> to vector<8x1xf32>
      %cst_11 = arith.constant 3.200000e+01 : f32
      %13 = vector.broadcast %cst_11 : f32 to vector<8x1xf32>
      %14 = arith.divf %12, %13 : vector<8x1xf32>
      %15 = vector.broadcast %14 : vector<8x1xf32> to vector<8x32xf32>
      %16 = arith.subf %10, %15 : vector<8x32xf32>
      %17 = arith.mulf %16, %16 : vector<8x32xf32>
      %cst_12 = arith.constant dense<0.000000e+00> : vector<8xf32>
      %18 = vector.multi_reduction <add>, %17, %cst_12 [1] : vector<8x32xf32> to vector<8xf32>
      %19 = vector.shape_cast %18 : vector<8xf32> to vector<8x1xf32>
      %cst_13 = arith.constant 3.200000e+01 : f32
      %20 = vector.broadcast %cst_13 : f32 to vector<8x1xf32>
      %21 = arith.divf %19, %20 : vector<8x1xf32>
      %cst_14 = arith.constant 9.99999974E-6 : f32
      %22 = vector.broadcast %cst_14 : f32 to vector<8x1xf32>
      %23 = arith.addf %21, %22 : vector<8x1xf32>
      %24 = math.rsqrt %23 : vector<8x1xf32>
      %c0_15 = arith.constant 0 : index
      %c0_16 = arith.constant 0 : index
      %25 = vector.load %arg3[%c0_15, %c0_16] : memref<1x32xf32, #tpu.memory_space<vmem>>, vector<1x32xf32>
      %c0_17 = arith.constant 0 : index
      %c0_18 = arith.constant 0 : index
      %26 = vector.load %arg4[%c0_17, %c0_18] : memref<1x32xf32, #tpu.memory_space<vmem>>, vector<1x32xf32>
      %27 = vector.broadcast %24 : vector<8x1xf32> to vector<8x32xf32>
      %28 = arith.mulf %16, %27 : vector<8x32xf32>
      %29 = vector.broadcast %25 : vector<1x32xf32> to vector<8x32xf32>
      %30 = arith.mulf %28, %29 : vector<8x32xf32>
      %31 = vector.broadcast %26 : vector<1x32xf32> to vector<8x32xf32>
      %32 = arith.addf %30, %31 : vector<8x32xf32>
      %c0_19 = arith.constant 0 : index
      %c0_20 = arith.constant 0 : index
      %33 = vector.load %arg8[%c0_19, %c0_20] : memref<8x32xf32, #tpu.memory_space<vmem>>, vector<8x32xf32>
      tpu.vector_store %arg8[%c0_19, %c0_20], %32 {strides = array<i32>} : memref<8x32xf32, #tpu.memory_space<vmem>>, vector<8x32xf32>,
    } else {
    }
    %c0 = arith.constant 0 : index
    %c0_1 = arith.constant 0 : index
    %3 = vector.load %arg8[%c0, %c0_1] : memref<8x32xf32, #tpu.memory_space<vmem>>, vector<8x32xf32>
    %c0_2 = arith.constant 0 : index
    %c0_3 = arith.constant 0 : index
    %4 = vector.load %arg5[%c0_2, %c0_3] : memref<32x128xf32, #tpu.memory_space<vmem>>, vector<32x128xf32>
    %cst = arith.constant dense<0.000000e+00> : vector<8x128xf32>
    %5 = tpu.matmul %3, %4, %cst {dimension_numbers = #tpu.dot_dimension_numbers<[1], [0], [0], [1], [0, 0, 1, 1], [], []>} : vector<8x32xf32>, vector<32x128xf32>, vector<8x128xf32> -> vector<8x128xf32>
    %c0_4 = arith.constant 0 : index
    %c0_5 = arith.constant 0 : index
    %6 = vector.load %arg6[%c0_4, %c0_5] : memref<1x128xf32, #tpu.memory_space<vmem>>, vector<1x128xf32>
    %7 = vector.broadcast %6 : vector<1x128xf32> to vector<8x128xf32>
    %8 = arith.addf %5, %7 : vector<8x128xf32>
    %c0_6 = arith.constant 0 : index
    %c0_7 = arith.constant 0 : index
    %9 = vector.load %arg7[%c0_6, %c0_7] : memref<8x128xf32, #tpu.memory_space<vmem>>, vector<8x128xf32>
    tpu.vector_store %arg7[%c0_6, %c0_7], %8 {strides = array<i32>} : memref<8x128xf32, #tpu.memory_space<vmem>>, vector<8x128xf32>,
    return
  }
  func.func @transform_0(%arg0: i32, %arg1: i32) -> (i32, i32) {
    %c0_i32 = arith.constant 0 : i32
    %c0_i32_0 = arith.constant 0 : i32
    return %arg0, %c0_i32 : i32, i32
  }
  func.func @transform_1(%arg0: i32, %arg1: i32) -> (i32, i32) {
    %c0_i32 = arith.constant 0 : i32
    %c0_i32_0 = arith.constant 0 : i32
    %c0_i32_1 = arith.constant 0 : i32
    return %c0_i32, %c0_i32_0 : i32, i32
  }
  func.func @transform_2(%arg0: i32, %arg1: i32) -> (i32, i32) {
    %c0_i32 = arith.constant 0 : i32
    %c0_i32_0 = arith.constant 0 : i32
    %c0_i32_1 = arith.constant 0 : i32
    return %c0_i32, %c0_i32_0 : i32, i32
  }
  func.func @transform_3(%arg0: i32, %arg1: i32) -> (i32, i32) {
    %c0_i32 = arith.constant 0 : i32
    %c0_i32_0 = arith.constant 0 : i32
    return %c0_i32, %arg1 : i32, i32
  }
  func.func @transform_4(%arg0: i32, %arg1: i32) -> (i32, i32) {
    %c0_i32 = arith.constant 0 : i32
    %c0_i32_0 = arith.constant 0 : i32
    return %c0_i32, %arg1 : i32, i32
  }
  func.func @transform_5(%arg0: i32, %arg1: i32) -> (i32, i32) {
    %c0_i32 = arith.constant 0 : i32
    return %arg0, %arg1 : i32, i32
  }
}

</mosaic_0001>

<bundles_post_ra>
// kernel: tpu_custom_call.1
= control target key start
LH: loop header
LB: loop body
LE: loop exit
PB: predicated region body
PF: predicated region fallthrough
CT: control target
= control target key end

     0   :  { %10 = vsyncpa [#allocation4], 0  ;;  %s1002_s0 = inlined_call_operand.hbm [shape: f32[16,32], index: 0, kind: input, shape index: {}]   ;;  %s1003_s1 = inlined_call_operand.hbm [shape: f32[1,32], index: 1, kind: input, shape index: {}]   ;;  %s1004_s2 = inlined_call_operand.vmem [shape: f32[1,32], index: 2, kind: input, shape index: {}]   ;;  %s1005_s3 = inlined_call_operand.hbm [shape: f32[32,128], index: 3, kind: input, shape index: {}]   ;;  %s1006_s4 = inlined_call_operand.vmem [shape: f32[1,128], index: 4, kind: input, shape index: {}]   ;;  %s1007_s5 = inlined_call_operand.hbm [shape: f32[16,128], index: 5, kind: output, shape index: {}]  }
   0x1   :  { %12 = vsyncpa [#allocation4 + $0x1], 0 }
   0x2   :  { %13 = vsyncpa [#allocation7], 0 }
   0x3   :  { %14 = vsyncpa [#allocation5], 0 }
   0x4   :  { %16 = vsyncpa [#allocation5 + $0x1], 0  ;;  %s842_s18 = smov 0   ;;  %s844_s19 = smov 0  }
   0x5   :  { %s846_s20 = smov 0   ;;  %s848_s21 = smov 0  }
   0x6   :  { %s850_s22 = smov 0   ;;  %s852_s23 = smov 0  }
   0x7 LB: > { %s517_s24 = sadd.s32 4294967295, %s805_s23   ;;  %s518_s25 = sadd.s32 4294967294, %s805_s23   ;;  %s805_s23 = sphi %s852_s23, %s22_s23   ;;  %s801_s22 = sphi %s850_s22, %s1017_s22   ;;  %s797_s21 = sphi %s848_s21, %s1016_s21   ;;  %s793_s20 = sphi %s846_s20, %s1015_s20   ;;  %s789_s19 = sphi %s844_s19, %s1014_s19   ;;  %s785_s18 = sphi %s842_s18, %s1013_s18  }
   0x8   : > { %p54_p0 = scmp.ne.s32.totalorder %s789_s19, %s785_s18  ;;  %p878_p1 = scmp.eq.s32.totalorder %s517_s24, 0 }
   0x9   : > { %p180_p2 = scmp.eq.s32.totalorder %s518_s25, 1  ;;  %p519_p4 = scmp.ge.s32.totalorder %s805_s23, 1 }
   0xa   : > { %p884_p3 = por %p878_p1, %p54_p0  ;;  %p187_p6 = scmp.lt.s32.totalorder %s805_s23, 3 }
   0xb   : > { %p889_p5 = por %p180_p2, %p54_p0  ;;  %s199_s6 = sshll.u32 %s1003_s1, 4  ;;  %s200_s6 = int_to_ptr.hbm [resolvable:$true] %s199_s6 }
   0xc   : > { %p897_p7 = pnand %p519_p4, %p187_p6  ;;  %p523_p8 = scmp.ge.s32.totalorder %s805_s23, 2 }
   0xd   : > { %s807_s8 = smov [#allocation6]   ;;  %s215_s12 = sshll.u32 %s1005_s3, 4  ;;  %s216_s12 = int_to_ptr.hbm [resolvable:$true] %s215_s12 }
   0xe   : > { %p548_p9 = pneg %p897_p7  ;;  %s201_s9 = sshll.u32 %s807_s8, 4  ;;  %s202_s9 = int_to_ptr.vmem [resolvable:$true] %s201_s9 }
   0xf   : > { %s808_s13 = smov [#allocation8]   ;;  %s809_s15 = smov 128  }
  0x10   : > { %p549_p10 = pnand %p548_p9, %p878_p1  ;;  %s217_s14 = sshll.u32 %s808_s13, 4  ;;  %s218_s14 = int_to_ptr.vmem [resolvable:$true] %s217_s14 }
  0x11   : > { %s810_s16 = smov 8   ;;  %p174_p11 = scmp.eq.s32.totalorder %s517_s24, 1 }
  0x12   : > { %551 = dma.hbm_to_vmem [thread:$0]  (!%p549_p10), %s200_s6, 16, %s202_s9, [#allocation7]  }
  0x13   : > { %554 = dma.hbm_to_vmem [thread:$0]  (!%p549_p10), %s216_s12, 512, %s218_s14, [#allocation7], %s809_s15, %s809_s15, %s810_s16  }
  0x14   : > { %s34_s17 = sadd.s32 1, %s801_s22  ;;  %s41_s25 = sadd.s32 1, %s793_s20 }
  0x15   : > { %p36_p12 = scmp.ge.s32.totalorder %s34_s17, 2  ;;  %p48_p13 = scmp.ne.s32.totalorder %s793_s20, %s789_s19 }
  0x16   : > { %p49_p0 = scmp.eq.s32.totalorder %s805_s23, 0  ;;  %p565_p4 = scmp.lt.s32.totalorder %s805_s23, 2 }
  0x17   : > { %s1019_s17 = smov (%p36_p12, %s34_s17), 0  ;;  %p918_p2 = por %p174_p11, %p48_p13 }
  0x18   : > { %s38_s30 = ssub.s32 %s801_s22, %s1019_s17  ;;  %s237_s6 = sand.u32 1, %s793_s20  }
  0x19   : > { %p39_p6 = scmp.eq.s32.totalorder %s38_s30, 0  ;;  %p50_p9 = por %p49_p0, %p48_p13 }
  0x1a   : > { %s524_s8 = sshll.u32 %s237_s6, 3  ;;  %s525_s24 = sshll.u32 %s801_s22, 3 }
  0x1b   : > { %s928_s9 = scalar_select %p39_p6, %s793_s20, %s41_s25  }
  0x1c   : > { %s245_s12 = scalar_lea.hbm %s1002_s0, %s525_s24  ;;  %s241_s14 = scalar_lea.vmem [#allocation3], %s524_s8 }
  0x1d   : > { %s247_s13 = sshll.u32 %s245_s12, 4  ;;  %s249_s15 = sshll.u32 %s241_s14, 4  ;;  %s248_s13 = int_to_ptr.hbm [resolvable:$true] %s247_s13  ;;  %s250_s15 = int_to_ptr.vmem [resolvable:$true] %s249_s15 }
  0x1e   : > { %p556_p10 = pnand %p565_p4, %p50_p9  ;;  %s238_s16 = scalar_lea.sflag [#allocation4], %s237_s6 }
  0x1f   : > { %258 = sbr.rel (%p897_p7) target bundleno = 447 (0x1bf), region = 40  ;;  %s938_s25 = sand.u32 (!%p897_p7), 1, %s789_s19  }
  0x20   : > { %558 = dma.hbm_to_vmem [thread:$0]  (!%p556_p10), %s248_s13, 128, %s250_s15, %s238_s16  }
  0x21   : > { %s527_s30 = sshll.u32 (!%p897_p7), %s938_s25, 3  ;;  %s261_s24 = scalar_lea.sflag (!%p897_p7), [#allocation4], %s938_s25 }
  0x22   : > { %s264_s8 = scalar_lea.vmem (!%p897_p7), [#allocation3], %s527_s30 }
  0x24   : > { %772 = dma.done.wait (%p884_p3), %s261_s24, 128  }
  0x25   : > { %774 = vsyncadd (%p884_p3), %s261_s24, 4294967168 }
  0x26   : > { %776 = dma.done.wait (%p878_p1), [#allocation7], 528  }
  0x27   : > { %778 = vsyncadd (%p878_p1), [#allocation7], 4294966768  ;;  %vm313_vm0 = vcmask 261120   ;;  %v312_v0 = vld [vmem:[%s264_s8] sm:$0xff]  ;;  %v811_v2 = vmov 32.0   ;;  %v355_v19 = vld [vmem:[#allocation8] sm:$0xff] }
  0x28   : > { %v314_v1 = vsel %vm313_vm0, %v312_v0, 0.0  ;;  %625 = vrcp.f32 %v811_v2  ;;  %v358_v14 = vld [vmem:[#allocation8 + $0x18] sm:$0xff]  ;;  %v357_v15 = vld [vmem:[#allocation8 + $0x10] sm:$0xff]  ;;  %v356_v16 = vld [vmem:[#allocation8 + $0x8] sm:$0xff]  ;;  %s533_s7 = sshll.u32 %s797_s21, 3  ;;  %s304_s14 = scalar_lea.vmem [#allocation9], %s527_s30 }
  0x29   : > { %315 = vadd.xlane.f32.xlu0 %v314_v1  ;;  %379 = vmatpush.msra.mxu0 %v358_v14  ;;  %v622_v27 = vld [vmem:[#allocation6] ss:$0 sm:$0xff]  ;;  %v623_v29 = vld [vmem:[%s1004_s2] ss:$0 sm:$0xff]  ;;  %s400_s11 = scalar_lea.hbm %s1007_s5, %s533_s7  ;;  %s402_s15 = sshll.u32 %s304_s14, 4  ;;  %s403_s15 = int_to_ptr.vmem [resolvable:$true] %s402_s15 }
  0x2a   : > { %v624_v34 = vld [vmem:[%s1006_s4] ss:$0 sm:$0xff]  ;;  %s404_s16 = sshll.u32 %s400_s11, 4  ;;  %s389_s24 = scalar_lea.sflag [#allocation5], %s938_s25  ;;  %s405_s16 = int_to_ptr.hbm [resolvable:$true] %s404_s16 }
  0x2b   : > { %380 = vmatpush.msra.mxu0 %v357_v15  ;;  %s733_s21 = sshra.s32 %s405_s16, 4  ;;  %s739_s7 = scalar_lea.hbm %s1007_s5, 16  ;;  %s734_s21 = int_to_ptr.hbm [resolvable:$true] %s733_s21 }
  0x2c   : > { %s735_s8 = scalar_lea.hbm %s734_s21, 8  ;;  %p740_p11 = scmp.lt.s32.totalorder %s734_s21, %s1007_s5 }
  0x2d   : > { %381 = vmatpush.msra.mxu0 %v356_v16  ;;  %p736_p1 = scmp.ne.s32.totalorder %s734_s21, %s735_s8  ;;  %p741_p12 = scmp.lt.s32.totalorder %s739_s7, %s735_s8 }
  0x2e   : > { %v626_v3 = vpop.eup %625 }
  0x2f   : > { %v318_v4 = vmul.f32 32.0, %v626_v3  ;;  %vm322_vm1 = vweird.f32 %v626_v3  ;;  %382 = vmatpush.msra.mxu0 %v355_v19  ;;  %p737_p3 = pnand %p736_p1, %p918_p2  ;;  %p742_p13 = por %p741_p12, %p740_p11 }
  0x31   : > { %v319_v5 = vsub.f32 1.0, %v318_v4  ;;  %p738_p7 = pneg %p737_p3 }
  0x33   : > { %v320_v6 = vmul.f32 %v626_v3, %v319_v5  ;;  %p743_p0 = pnand %p742_p13, %p738_p7 }
  0x35   : > { %v321_v7 = vadd.f32 %v626_v3, %v320_v6 }
  0x37   : > { %v323_v8 = vsel %vm322_vm1, %v626_v3, %v321_v7 }
  0x9c   : > { %v316_v9 = vpop.xlane.xlu0 %315 }
  0x9d   : > { %v324_v10 = vmul.f32 %v323_v8, %v316_v9 }
  0x9f   : > { %v325_v11 = vsub.f32 %v312_v0, %v324_v10 }
  0xa1   : > { %v326_v12 = vmul.f32 %v325_v11, %v325_v11 }
  0xa3   : > { %v327_v13 = vsel %vm313_vm0, %v326_v12, 0.0 }
  0xa4   : > { %328 = vadd.xlane.f32.xlu0 %v327_v13 }
 0x117   : > { %v329_v17 = vpop.xlane.xlu0 %328 }
 0x118   : > { %v330_v18 = vmul.f32 %v329_v17, %v323_v8 }
 0x11a   : > { %v331_v20 = vadd.f32 1e-05, %v330_v18 }
 0x11c   : > { %627 = vrsqrt.f32 %v331_v20  ;;  %vm338_vm3 = vweird.f32 %v331_v20 }
 0x122   : > { %v628_v21 = vpop.eup %627 }
 0x123   : > { %v333_v22 = vmul.f32 %v628_v21, %v331_v20  ;;  %vm339_vm2 = vweird.f32 %v628_v21 }
 0x124   : > { %vm340_vm4 = vmor %vm338_vm3, %vm339_vm2 }
 0x125   : > { %v334_v23 = vmul.f32 %v628_v21, %v333_v22 }
 0x127   : > { %v335_v24 = vmul.f32 0.5, %v334_v23 }
 0x129   : > { %v336_v25 = vsub.f32 1.5, %v335_v24 }
 0x12b   : > { %v337_v26 = vmul.f32 %v628_v21, %v336_v25 }
 0x12d   : > { %v341_v28 = vsel %vm340_vm4, %v628_v21, %v337_v26 }
 0x12e   : > { %v344_v30 = vmul.f32 %v341_v28, %v325_v11 }
 0x130   : > { %v348_v31 = vmul.f32 %v622_v27, %v344_v30 }
 0x132   : > { %v352_v32 = vadd.f32 %v623_v29, %v348_v31 }
 0x134   : > { %353 = vst.msk [vmem:[#allocation2] sm:$0xff] %vm313_vm0, %v352_v32 }
 0x13b   : > { %v354_v33 = vld [vmem:[#allocation2] sm:$0xff] }
 0x13c   : > { %531 = vmatmul.msk.f32.vlgmr.msra.gmra.mxu0 %vm313_vm0, %v354_v33 }
 0x1b9   : > { %v384_v35 = vpop.f32.mrf.mxu0 }
 0x1ba   : > { %v385_v36 = vadd.f32 %v624_v34, %v384_v35 }
 0x1bc   : > { %387 = vst [vmem:[%s304_s14] sm:$0xff] %v385_v36 }
 0x1bd   : > { %746 = shalt.err (!%p743_p0)
}
 0x1be   : > { %546 = dma.vmem_to_hbm [thread:$0]  (%p918_p2), %s403_s15, 128, %s405_s16, %s389_s24  }
 0x1bf PF: > { %s416_s25 = sand.u32 1, %s785_s18   ;;  %p560_p4 = pnand %p523_p8, %p889_p5 }
 0x1c0   : > { %s417_s10 = scalar_lea.sflag [#allocation5], %s416_s25 }
 0x1c1   : > { %p561_p6 = pneg %p560_p4 }
 0x1c3   : > { %780 = dma.done.wait (%p561_p6), %s417_s10, 128  }
 0x1c4   : > { %782 = vsyncadd (%p561_p6), %s417_s10, 4294967168  ;;  %s22_s23 = sadd.s32 1, %s805_s23   ;;  %s1013_s18 = smov %s789_s19 }
 0x1c5   : > { %p19_p9 = scmp.ge.s32.totalorder %s22_s23, 4   ;;  %s1014_s19 = smov %s793_s20 }
 0x1c6   : > { %s1015_s20 = smov %s928_s9  ;;  %s1016_s21 = smov %s801_s22 }
 0x1c7   : > { %s1017_s22 = smov %s1019_s17  ;;  %21 = sbr.rel (!%p19_p9) target bundleno = 7 (0x7), region = 101 }
 0x1cc   :  { %423 = vsyncpa [#allocation4], 1 }
 0x1cd   :  { %425 = vsyncpa [#allocation4 + $0x1], 1 }
 0x1ce   :  { %426 = vsyncpa [#allocation7], 1 }
 0x1cf   :  { %427 = vsyncpa [#allocation5], 1 }
 0x1d0   :  { %429 = vsyncpa [#allocation5 + $0x1], 1 }

</bundles_post_ra>
